<compile_context>
chip_gen: v6e
topology: v6e:2x2x1
jax: 0.10.0
libtpu: 0.0.40
codegen_flags: <defaults>
</compile_context>

<pallas_src>
import jax
import jax.numpy as jnp
from jax import lax
from jax.experimental import pallas as pl
from jax.experimental.pallas import tpu as pltpu

NUM_CLASSES = 5


def _round_up(x, m):
    return ((x + m - 1) // m) * m


def _choose_tiling(batch, dp, *, elem_bytes=4, x_budget_bytes=16 << 20,
                   row_cap=1024):
    """VMEM-budget-driven batch tiling.

    Returns (bt, sub, padded_batch):
      bt  : rows per grid step; double-buffered x slab 2*bt*dp*elem_bytes kept
            under x_budget_bytes, capped at row_cap, multiple of 256 when large
            (so the compute sub-chunk divides it), multiple of 8 otherwise.
      sub : per-iteration compute sub-chunk (<=256) that divides bt; bounds
            vreg live ranges in the matmul/CE epilogue.
      padded_batch : batch rounded up to a multiple of bt (padded rows masked).
    """
    fit = x_budget_bytes // max(1, 2 * dp * elem_bytes)
    bt_max = int(max(8, min(row_cap, fit)))
    bt_max = (bt_max // 256) * 256 if bt_max >= 256 else (bt_max // 8) * 8
    bt = min(bt_max, _round_up(batch, 8))
    sub = min(256, bt)
    if bt % sub:
        bt = min(bt_max, _round_up(bt, sub))   # bt_max is a multiple of 256 here
    padded = _round_up(batch, bt)
    return bt, sub, padded


# ---------------------------------------------------------------------------
# Inference kernel: y_pred = sigmoid(x @ Wt + b), row sub-chunked.
#   x_ref: (Bt, Dp), w_ref: (Dp, C)  [MXU-native (K,N)], b_ref: (1, C)
# ---------------------------------------------------------------------------
def make_linear_sigmoid_kernel(bt, sub):
    n_sub = bt // sub

    def kernel(x_ref, w_ref, b_ref, o_ref):
        @pl.loop(0, n_sub)
        def _(s):
            r0 = pl.multiple_of(s * sub, sub)
            z = lax.dot_general(
                x_ref[pl.ds(r0, sub), :], w_ref[...],
                dimension_numbers=(((1,), (0,)), ((), ())),
                preferred_element_type=jnp.float32)          # (sub, C)
            o_ref[pl.ds(r0, sub), :] = jax.nn.sigmoid(
                z + b_ref[...]).astype(o_ref.dtype)

    return kernel


# ---------------------------------------------------------------------------
# Training kernel: fused matmul + sigmoid + cross-entropy, per-tile partial
# loss output (no resident accumulator -> grid axis can run in parallel on
# v7x's two TensorCores).  Padded rows are masked via a global row index.
# ---------------------------------------------------------------------------
def make_fused_loss_kernel(batch_orig, bt, sub):
    n_sub = bt // sub

    def kernel(x_ref, w_ref, b_ref, y_ref, loss_ref):
        tile_base = pl.program_id(0) * bt

        def body(s, acc):
            r0 = pl.multiple_of(s * sub, sub)
            z = lax.dot_general(
                x_ref[pl.ds(r0, sub), :], w_ref[...],
                dimension_numbers=(((1,), (0,)), ((), ())),
                preferred_element_type=jnp.float32)          # (sub, C)
            p = jax.nn.sigmoid(z + b_ref[...])
            # torch cross_entropy on the sigmoid outputs:
            #   per-row loss = logsumexp(p) - p[label]
            m = jnp.max(p, axis=-1, keepdims=True)
            lse = m + jnp.log(jnp.sum(jnp.exp(p - m), axis=-1, keepdims=True))
            cls = lax.broadcasted_iota(jnp.int32, p.shape, 1)
            picked = jnp.sum(
                jnp.where(cls == y_ref[pl.ds(r0, sub), :], p, 0.0),
                axis=-1, keepdims=True)                       # (sub, 1)
            # Mask padded batch rows (they still produce a nonzero lse).
            rows = tile_base + r0 + lax.broadcasted_iota(jnp.int32, (sub, 1), 0)
            per_row = jnp.where(rows < batch_orig, lse - picked, 0.0)
            return acc + jnp.sum(per_row, axis=0, keepdims=True)

        partial = lax.fori_loop(0, n_sub, body, jnp.zeros((1, 1), jnp.float32))
        loss_ref[0, :, :] = partial                           # raw sum; 1/B in wrapper

    return kernel


def torch_model_forward(x, weight, bias, y=None, *, stream_dtype=None):
    """Replicates TorchModel.forward.
    x: (B, D) f32, weight: (C, D) f32, bias: (C,) f32, y: (B,) int labels.
    stream_dtype=jnp.bfloat16 optionally halves the streamed x/W bytes
    (compute stays f32)."""
    x = jnp.asarray(x, jnp.float32)
    weight = jnp.asarray(weight, jnp.float32)
    bias = jnp.asarray(bias, jnp.float32)

    B, D = x.shape
    C = weight.shape[0]

    # Pad contraction dim to a lane multiple (zeros keep the dot exact).
    Dp = _round_up(max(D, 1), 128)
    if Dp != D:
        x = jnp.pad(x, ((0, 0), (0, Dp - D)))
        weight = jnp.pad(weight, ((0, 0), (0, Dp - D)))

    elem_bytes = 2 if stream_dtype == jnp.bfloat16 else 4
    bt, sub, b_pad = _choose_tiling(B, Dp, elem_bytes=elem_bytes)
    if b_pad != B:
        x = jnp.pad(x, ((0, b_pad - B), (0, 0)))

    wt = weight.T                       # (Dp, C): one-time XLA transpose, MXU-native RHS
    b2 = bias.reshape(1, C)
    if stream_dtype is not None:
        x = x.astype(stream_dtype)
        wt = wt.astype(stream_dtype)

    num_tiles = b_pad // bt
    grid = (num_tiles,)

    x_spec = pl.BlockSpec((bt, Dp), lambda i: (i, 0))
    w_spec = pl.BlockSpec((Dp, C), lambda i: (0, 0))     # resident in VMEM
    b_spec = pl.BlockSpec((1, C), lambda i: (0, 0))      # resident in VMEM

    # Explicit scoped-VMEM budget: x double-buffer + lane-padded weight
    # double-buffer + out/label tiles + headroom (clamped to sane bounds).
    vmem_needed = (2 * bt * Dp * elem_bytes
                   + 2 * Dp * 128 * elem_bytes
                   + 4 * bt * 128 * 4)
    vmem_limit = int(min(max(vmem_needed + (4 << 20), 32 << 20), 64 << 20))
    cparams = pltpu.CompilerParams(
        dimension_semantics=("parallel",),
        vmem_limit_bytes=vmem_limit)

    if y is None:
        out = pl.pallas_call(
            make_linear_sigmoid_kernel(bt, sub),
            out_shape=jax.ShapeDtypeStruct((b_pad, C), jnp.float32),
            grid=grid,
            in_specs=[x_spec, w_spec, b_spec],
            out_specs=pl.BlockSpec((bt, C), lambda i: (i, 0)),
            compiler_params=cparams,
        )(x, wt, b2)
        return out[:B]

    # Training path: per-tile partial losses, summed + scaled once outside.
    # NOTE: out-of-range labels silently give picked=0 (torch would raise).
    y2 = jnp.zeros((b_pad, 1), jnp.int32).at[:B, 0].set(jnp.asarray(y, jnp.int32))
    partials = pl.pallas_call(
        make_fused_loss_kernel(B, bt, sub),
        out_shape=jax.ShapeDtypeStruct((num_tiles, 1, 1), jnp.float32),
        grid=grid,
        in_specs=[x_spec, w_spec, b_spec,
                  pl.BlockSpec((bt, 1), lambda i: (i, 0))],
        out_specs=pl.BlockSpec((1, 1, 1), lambda i: (i, 0, 0)),
        compiler_params=cparams,
    )(x, wt, b2, y2)
    return jnp.sum(partials) / B


if __name__ == "__main__":
    key = jax.random.PRNGKey(0)
    k_x, k_w, k_b, k_y = jax.random.split(key, 4)

    batch = 8
    input_size = 32

    # Deterministic synthetic parameters (shapes from nn.Linear(input_size, 5)).
    weight = jax.random.normal(k_w, (NUM_CLASSES, input_size), jnp.float32) * 0.1
    bias = jax.random.normal(k_b, (NUM_CLASSES,), jnp.float32) * 0.1

    x = jax.random.normal(k_x, (batch, input_size), jnp.float32)
    y = jax.random.randint(k_y, (batch,), 0, NUM_CLASSES, jnp.int32)

    # Inference path (y=None) -> sigmoid probabilities.
    y_pred = jax.block_until_ready(torch_model_forward(x, weight, bias))

    # Training path (y given) -> scalar cross-entropy loss (single fused kernel).
    loss = jax.block_until_ready(torch_model_forward(x, weight, bias, y))

    # Sanity-check against plain JAX reference.
    ref_pred = jax.nn.sigmoid(x @ weight.T + bias)
    ref_lse = jax.scipy.special.logsumexp(ref_pred, axis=-1)
    ref_loss = jnp.mean(ref_lse - ref_pred[jnp.arange(batch), y])
    assert y_pred.shape == (batch, NUM_CLASSES)
    assert jnp.allclose(y_pred, ref_pred, atol=1e-5), "y_pred mismatch"
    assert jnp.allclose(loss, ref_loss, atol=1e-5), "loss mismatch"

    print("KERNEL_OK")
</pallas_src>

<mosaic_0001>
module attributes {stable_mosaic.version = 11 : i64} {
  func.func @kernel(%arg0: i32, %arg1: memref<8x128xf32, #tpu.memory_space<vmem>>, %arg2: memref<128x5xf32, #tpu.memory_space<vmem>>, %arg3: memref<1x5xf32, #tpu.memory_space<vmem>>, %arg4: memref<8x5xf32, #tpu.memory_space<vmem>>) attributes {dimension_semantics = [#tpu.dimension_semantics<parallel>], iteration_bounds = array<i64: 1>, scalar_prefetch = 0 : i64, scratch_operands = 0 : i64, tpu.core_type = #tpu.core_type<tc>, window_params = [{transform_indices = @transform_0, window_bounds = array<i64: 8, 128>}, {pipeline_mode = #tpu.pipeline_mode<synchronous>, transform_indices = @transform_1, window_bounds = array<i64: 128, 5>}, {pipeline_mode = #tpu.pipeline_mode<synchronous>, transform_indices = @transform_2, window_bounds = array<i64: 1, 5>}, {transform_indices = @transform_3, window_bounds = array<i64: 8, 5>}]} {
    %c0_i32 = arith.constant 0 : i32
    %c1_i32 = arith.constant 1 : i32
    %0 = arith.muli %c0_i32, %c1_i32 : i32
    %c0_i32_0 = arith.constant 0 : i32
    %1 = arith.addi %c0_i32_0, %0 : i32
    %c8_i32 = arith.constant 8 : i32
    %2 = arith.muli %1, %c8_i32 : i32
    %3 = tpu.assume_multiple %2, 8 : i32
    %4 = arith.index_cast %3 : i32 to index
    %c0 = arith.constant 0 : index
    %5 = vector.load %arg1[%4, %c0] : memref<8x128xf32, #tpu.memory_space<vmem>>, vector<8x128xf32>
    %c0_1 = arith.constant 0 : index
    %c0_2 = arith.constant 0 : index
    %6 = vector.load %arg2[%c0_1, %c0_2] : memref<128x5xf32, #tpu.memory_space<vmem>>, vector<128x5xf32>
    %cst = arith.constant dense<0.000000e+00> : vector<8x5xf32>
    %7 = tpu.matmul %5, %6, %cst {dimension_numbers = #tpu.dot_dimension_numbers<[1], [0], [0], [1], [0, 0, 1, 1], [], []>} : vector<8x128xf32>, vector<128x5xf32>, vector<8x5xf32> -> vector<8x5xf32>
    %c0_3 = arith.constant 0 : index
    %c0_4 = arith.constant 0 : index
    %8 = vector.load %arg3[%c0_3, %c0_4] : memref<1x5xf32, #tpu.memory_space<vmem>>, vector<1x5xf32>
    %9 = vector.broadcast %8 : vector<1x5xf32> to vector<8x5xf32>
    %10 = arith.addf %7, %9 : vector<8x5xf32>
    %11 = arith.negf %10 : vector<8x5xf32>
    %12 = math.exp %11 : vector<8x5xf32>
    %cst_5 = arith.constant 1.000000e+00 : f32
    %13 = vector.broadcast %cst_5 : f32 to vector<8x5xf32>
    %14 = arith.addf %13, %12 : vector<8x5xf32>
    %15 = arith.divf %13, %14 : vector<8x5xf32>
    %16 = arith.index_cast %3 : i32 to index
    %c0_6 = arith.constant 0 : index
    %17 = vector.load %arg4[%16, %c0_6] : memref<8x5xf32, #tpu.memory_space<vmem>>, vector<8x5xf32>
    tpu.vector_store %arg4[%16, %c0_6], %15 {strides = array<i32>} : memref<8x5xf32, #tpu.memory_space<vmem>>, vector<8x5xf32>,
    %c1_i32_7 = arith.constant 1 : i32
    return
  }
  func.func @transform_0(%arg0: i32) -> (i32, i32) {
    %c0_i32 = arith.constant 0 : i32
    %c0_i32_0 = arith.constant 0 : i32
    return %arg0, %c0_i32 : i32, i32
  }
  func.func @transform_1(%arg0: i32) -> (i32, i32) {
    %c0_i32 = arith.constant 0 : i32
    %c0_i32_0 = arith.constant 0 : i32
    %c0_i32_1 = arith.constant 0 : i32
    return %c0_i32, %c0_i32_0 : i32, i32
  }
  func.func @transform_2(%arg0: i32) -> (i32, i32) {
    %c0_i32 = arith.constant 0 : i32
    %c0_i32_0 = arith.constant 0 : i32
    %c0_i32_1 = arith.constant 0 : i32
    return %c0_i32, %c0_i32_0 : i32, i32
  }
  func.func @transform_3(%arg0: i32) -> (i32, i32) {
    %c0_i32 = arith.constant 0 : i32
    %c0_i32_0 = arith.constant 0 : i32
    return %arg0, %c0_i32 : i32, i32
  }
}

</mosaic_0001>

<bundles_post_ra>
// kernel: tpu_custom_call.1
= control target key start
LH: loop header
LB: loop body
LE: loop exit
PB: predicated region body
PF: predicated region fallthrough
CT: control target
= control target key end

     0   :  { %v214_v1 = vmov 0.0   ;;  %vm215_vm0 = vmmov 0   ;;  %s294_s0 = inlined_call_operand.vmem [shape: f32[8,128], index: 0, kind: input, shape index: {}]   ;;  %s295_s1 = inlined_call_operand.vmem [shape: f32[128,5], index: 1, kind: input, shape index: {}]   ;;  %s296_s2 = inlined_call_operand.vmem [shape: f32[1,5], index: 2, kind: input, shape index: {}]   ;;  %s297_s3 = inlined_call_operand.hbm [shape: f32[8,5], index: 3, kind: output, shape index: {}]  }
   0x1   :  { %v31_v0 = vld [vmem:[%s295_s1 + $0x78] sm:$0xff]  ;;  %150 = vmatprep.subr.mxu0 %v214_v1  ;;  %v30_v2 = vld [vmem:[%s295_s1 + $0x70] sm:$0xff]  ;;  %182 = vmatprep.mubr.msk.f32.mxu0 %vm215_vm0, %v214_v1  ;;  %v29_v3 = vld [vmem:[%s295_s1 + $0x68] sm:$0xff] }
   0x2   :  { %151 = vmatpush3.msra.mxu0 %v31_v0  ;;  %v28_v4 = vld [vmem:[%s295_s1 + $0x60] sm:$0xff] }
   0x3   :  { %152 = vmatprep.subr.mxu0 %v214_v1 }
   0x4   :  { %153 = vmatpush3.msra.mxu0 %v30_v2 }
   0x5   :  { %154 = vmatprep.subr.mxu0 %v214_v1 }
   0x6   :  { %155 = vmatpush3.msra.mxu0 %v29_v3 }
   0x7   :  { %8 = vsyncpa [#allocation3], 0  ;;  %156 = vmatprep.subr.mxu0 %v214_v1  ;;  %v27_v5 = vld [vmem:[%s295_s1 + $0x58] sm:$0xff]  ;;  %v26_v6 = vld [vmem:[%s295_s1 + $0x50] sm:$0xff]  ;;  %vm115_vm1 = vcmask 39936  }
   0x8   :  { %157 = vmatpush3.msra.mxu0 %v28_v4  ;;  %v25_v7 = vld [vmem:[%s295_s1 + $0x48] sm:$0xff]  ;;  %v24_v8 = vld [vmem:[%s295_s1 + $0x40] sm:$0xff]  ;;  %v23_v9 = vld [vmem:[%s295_s1 + $0x38] sm:$0xff] }
   0x9   :  { %158 = vmatprep.subr.mxu0 %v214_v1  ;;  %v22_v10 = vld [vmem:[%s295_s1 + $0x30] sm:$0xff]  ;;  %v21_v11 = vld [vmem:[%s295_s1 + $0x28] sm:$0xff]  ;;  %v20_v12 = vld [vmem:[%s295_s1 + $0x20] sm:$0xff] }
   0xa   :  { %159 = vmatpush3.msra.mxu0 %v27_v5  ;;  %v19_v13 = vld [vmem:[%s295_s1 + $0x18] sm:$0xff]  ;;  %v18_v14 = vld [vmem:[%s295_s1 + $0x10] sm:$0xff]  ;;  %v17_v15 = vld [vmem:[%s295_s1 + $0x8] sm:$0xff] }
   0xb   :  { %160 = vmatprep.subr.mxu0 %v214_v1  ;;  %v16_v16 = vld [vmem:[%s295_s1] sm:$0xff]  ;;  %s216_s1 = smov [#allocation2]  }
   0xc   :  { %161 = vmatpush3.msra.mxu0 %v26_v6  ;;  %v15_v17 = vld [vmem:[%s294_s0] sm:$0xff]  ;;  %s123_s21 = sshll.u32 %s216_s1, 4  ;;  %s124_s21 = int_to_ptr.vmem [resolvable:$true] %s123_s21 }
   0xd   :  { %162 = vmatprep.subr.mxu0 %v214_v1  ;;  %v131_v18 = vld [vmem:[%s296_s2] ss:$0 sm:$0xff]  ;;  %s192_s0 = scalar_lea.vmem %s124_s21, 128  ;;  %p197_p1 = scmp.lt.s32.totalorder %s124_s21, %s124_s21 }
   0xe   :  { %163 = vmatpush3.msra.mxu0 %v25_v7  ;;  %p193_p0 = scmp.ne.s32.totalorder %s124_s21, %s192_s0  ;;  %p198_p2 = scmp.lt.s32.totalorder %s192_s0, %s192_s0 }
   0xf   :  { %164 = vmatprep.subr.mxu0 %v214_v1 }
  0x10   :  { %165 = vmatpush3.msra.mxu0 %v24_v8  ;;  %p199_p3 = por %p198_p2, %p197_p1 }
  0x11   :  { %166 = vmatprep.subr.mxu0 %v214_v1 }
  0x12   :  { %167 = vmatpush3.msra.mxu0 %v23_v9  ;;  %p200_p4 = pnand %p199_p3, %p193_p0 }
  0x13   :  { %168 = vmatprep.subr.mxu0 %v214_v1 }
  0x14   :  { %169 = vmatpush3.msra.mxu0 %v22_v10 }
  0x15   :  { %170 = vmatprep.subr.mxu0 %v214_v1 }
  0x16   :  { %171 = vmatpush3.msra.mxu0 %v21_v11 }
  0x17   :  { %172 = vmatprep.subr.mxu0 %v214_v1 }
  0x18   :  { %173 = vmatpush3.msra.mxu0 %v20_v12 }
  0x19   :  { %174 = vmatprep.subr.mxu0 %v214_v1 }
  0x1a   :  { %175 = vmatpush3.msra.mxu0 %v19_v13 }
  0x1b   :  { %176 = vmatprep.subr.mxu0 %v214_v1 }
  0x1c   :  { %177 = vmatpush3.msra.mxu0 %v18_v14 }
  0x1d   :  { %178 = vmatprep.subr.mxu0 %v214_v1 }
  0x1e   :  { %179 = vmatpush3.msra.mxu0 %v17_v15 }
  0x1f   :  { %180 = vmatprep.subr.mxu0 %v214_v1 }
  0x20   :  { %181 = vmatpush3.msra.mxu0 %v16_v16 }
  0x21   :  { %183 = vmatmul.mubr.f32.vlgmr.msra.gmra.mxu0 %v15_v17 }
  0xe1   :  { %v105_v19 = vpop.f32.mrf.mxu0 }
  0xe2   :  { %v106_v20 = vadd.f32 %v131_v18, %v105_v19 }
  0xe3   :  { %v184_v21 = vpop.f32.mrf.mxu0 }
  0xe4   :  { %v132_v22 = vmul.f32 -1.442695, %v106_v20 }
  0xe6   :  { %188 = vpow2.f32 %v132_v22 }
  0xf3   :  { %v189_v23 = vpop.eup %188 }
  0xf4   :  { %v112_v24 = vadd.f32 1.0, %v189_v23 }
  0xf6   :  { %190 = vrcp.f32 %v112_v24 }
 0x103   :  { %v191_v25 = vpop.eup %190 }
 0x104   :  { %116 = vst.msk [vmem:[#allocation2] sm:$0xff] %vm115_vm1, %v191_v25 }
 0x105   :  { %203 = shalt.err (!%p200_p4)
}
 0x106   :  { %126 = dma.vmem_to_hbm [thread:$0]  %s124_s21, 128, %s297_s3, [#allocation3]  }
 0x107   :  { %212 = dma.done.wait [#allocation3], 128  }
 0x108   :  { %213 = vsyncadd [#allocation3], 4294967168 }
 0x109   :  { %130 = vsyncpa [#allocation3], 1 }

</bundles_post_ra>
